<compile_context>
chip_gen: v6e
topology: v6e:2x2x1
jax: 0.10.0
libtpu: 0.0.40
codegen_flags: <defaults>
</compile_context>

<pallas_src>
import jax
import jax.numpy as jnp
from jax.experimental import pallas as pl
from jax.experimental.pallas import tpu as pltpu

EPS = 1e-5
NEG_SLOPE = 0.2


def _leaky_relu(x):
    # Valid for 0 < slope < 1: max(x, slope*x) == leaky_relu(x).
    return jnp.maximum(x, NEG_SLOPE * x)


def make_kernel(batch, in_dims, out_dims):
    """Build the fused kernel with static layer offsets into the packed params."""
    off = (0, in_dims, 2 * in_dims, 3 * in_dims, 3 * in_dims + out_dims)
    inv_n = 1.0 / batch

    def linear_bn(x, w_ref, gb_ref, lo, hi):
        d = hi - lo
        w = w_ref[:, lo:hi]            # (in, d)   static ref-slice view
        g = gb_ref[0:1, lo:hi]         # (1, d)
        be = gb_ref[1:2, lo:hi]        # (1, d)

        # Linear (bias omitted -- cancelled by training-mode BN mean subtraction).
        z = jnp.dot(x, w, preferred_element_type=jnp.float32)

        # Single fused reduction for E[z] and E[z^2]; per-column pivot (row 0)
        # keeps the one-pass variance numerically tight.
        pivot = z[0:1, :]
        zc = z - pivot
        sums = jnp.sum(jnp.concatenate([zc, zc * zc], axis=1),
                       axis=0, keepdims=True)          # (1, 2d)
        mean_c = sums[:, :d] * inv_n
        var = jnp.maximum(sums[:, d:] * inv_n - mean_c * mean_c, 0.0)
        mean = mean_c + pivot

        # Folded BN normalize + affine: one FMA over the (B, d) tile.
        s = g * jax.lax.rsqrt(var + EPS)               # (1, d)
        t = be - mean * s                              # (1, d)
        return z * s + t

    def kernel(x_ref, w_ref, gb_ref, out_ref):
        x = x_ref[...].astype(jnp.float32)

        # layer1: Linear -> BN -> LeakyReLU
        h1 = _leaky_relu(linear_bn(x, w_ref, gb_ref, off[0], off[1]))

        # layer2: BasicBlock (identity residual) -> LeakyReLU
        a = _leaky_relu(linear_bn(h1, w_ref, gb_ref, off[1], off[2]))
        b = linear_bn(a, w_ref, gb_ref, off[2], off[3])
        h2 = _leaky_relu(b + h1)

        # layer3: Linear -> BN
        out = linear_bn(h2, w_ref, gb_ref, off[3], off[4])
        out_ref[...] = out.astype(out_ref.dtype)

    return kernel


def prepare_params(params):
    """One-time packing, hoisted out of the per-call path.

    Returns:
      w_packed : (in_dims, 3*in_dims + out_dims)  -- [W1 | W2a | W2b | W3], each (in, out)
      gb_packed: (2, 3*in_dims + out_dims)        -- row 0 gammas, row 1 betas
    Linear biases are intentionally dropped (exactly cancelled by the
    training-mode BatchNorm immediately following every Linear).
    """
    def wt(v):
        return jnp.asarray(v, jnp.float32).T

    def row(v):
        return jnp.asarray(v, jnp.float32).reshape(1, -1)

    w_packed = jnp.concatenate(
        [wt(params["w1"]), wt(params["w2a"]), wt(params["w2b"]), wt(params["w3"])],
        axis=1)
    g_row = jnp.concatenate(
        [row(params["g1"]), row(params["g2a"]), row(params["g2b"]), row(params["g3"])],
        axis=1)
    b_row = jnp.concatenate(
        [row(params["be1"]), row(params["be2a"]), row(params["be2b"]), row(params["be3"])],
        axis=1)
    gb_packed = jnp.concatenate([g_row, b_row], axis=0)
    return w_packed, gb_packed


def compression_block(x, w_packed, gb_packed, out_dims):
    """x: (num_instances, batch, in_dims) f32.  Each instance is an independent
    batch (its own BN statistics); one grid step per instance."""
    n, batch, in_dims = x.shape
    wtot = w_packed.shape[1]
    kernel = make_kernel(batch, in_dims, out_dims)

    return pl.pallas_call(
        kernel,
        out_shape=jax.ShapeDtypeStruct((n, batch, out_dims), jnp.float32),
        grid=(n,),
        in_specs=[
            pl.BlockSpec((None, batch, in_dims), lambda i: (i, 0, 0)),
            pl.BlockSpec((in_dims, wtot), lambda i: (0, 0)),   # resident across grid
            pl.BlockSpec((2, wtot), lambda i: (0, 0)),         # resident across grid
        ],
        out_specs=pl.BlockSpec((None, batch, out_dims), lambda i: (i, 0, 0)),
        compiler_params=pltpu.CompilerParams(
            dimension_semantics=("parallel",)),
    )(jnp.asarray(x, jnp.float32), w_packed, gb_packed)


def _reference(x, params):
    """Pure-JAX reference of the PyTorch forward (training-mode BN, biases kept),
    vmapped over independent instances."""
    def one_instance(xi):
        def linear_bn(h, w, b, g, be):
            z = h @ w.T + b
            mean = jnp.mean(z, axis=0, keepdims=True)
            var = jnp.mean((z - mean) ** 2, axis=0, keepdims=True)
            return (z - mean) / jnp.sqrt(var + EPS) * g + be

        def lrelu(h):
            return jnp.where(h > 0, h, NEG_SLOPE * h)

        h1 = lrelu(linear_bn(xi, params["w1"], params["b1"], params["g1"], params["be1"]))
        a = lrelu(linear_bn(h1, params["w2a"], params["b2a"], params["g2a"], params["be2a"]))
        b = linear_bn(a, params["w2b"], params["b2b"], params["g2b"], params["be2b"])
        h2 = lrelu(b + h1)
        return linear_bn(h2, params["w3"], params["b3"], params["g3"], params["be3"])

    return jax.vmap(one_instance)(x)


def _init_params(key, in_dims, out_dims):
    ks = jax.random.split(key, 8)

    def lin(k, o, i):
        kw, kb = jax.random.split(k)
        scale = 1.0 / jnp.sqrt(i)
        w = jax.random.uniform(kw, (o, i), jnp.float32, -scale, scale)
        b = jax.random.uniform(kb, (o,), jnp.float32, -scale, scale)
        return w, b

    def bn(k, d):
        kg, kb = jax.random.split(k)
        g = 1.0 + 0.05 * jax.random.normal(kg, (d,), jnp.float32)
        be = 0.05 * jax.random.normal(kb, (d,), jnp.float32)
        return g, be

    w1, b1 = lin(ks[0], in_dims, in_dims)
    g1, be1 = bn(ks[1], in_dims)
    w2a, b2a = lin(ks[2], in_dims, in_dims)
    g2a, be2a = bn(ks[3], in_dims)
    w2b, b2b = lin(ks[4], in_dims, in_dims)
    g2b, be2b = bn(ks[5], in_dims)
    w3, b3 = lin(ks[6], out_dims, in_dims)
    g3, be3 = bn(ks[7], out_dims)

    return dict(
        w1=w1, b1=b1, g1=g1, be1=be1,
        w2a=w2a, b2a=b2a, g2a=g2a, be2a=be2a,
        w2b=w2b, b2b=b2b, g2b=g2b, be2b=be2b,
        w3=w3, b3=b3, g3=g3, be3=be3,
    )


if __name__ == "__main__":
    key = jax.random.PRNGKey(0)
    kx, kp = jax.random.split(key)

    n_instances, batch, in_dims, out_dims = 4, 8, 32, 16
    x = jax.random.normal(kx, (n_instances, batch, in_dims), jnp.float32)
    params = _init_params(kp, in_dims, out_dims)

    # Pre-transpose / pack weights ONCE, outside the per-call path.
    w_packed, gb_packed = prepare_params(params)
    w_packed, gb_packed = jax.block_until_ready((w_packed, gb_packed))

    out = compression_block(x, w_packed, gb_packed, out_dims)
    out = jax.block_until_ready(out)

    ref = _reference(x, params)
    assert out.shape == (n_instances, batch, out_dims)
    assert jnp.allclose(out, ref, atol=1e-4, rtol=1e-4), "mismatch vs reference"

    print("KERNEL_OK")
</pallas_src>

<mosaic_0001>
module attributes {stable_mosaic.version = 11 : i64} {
  func.func @kernel(%arg0: i32, %arg1: memref<1x8x32xf32, #tpu.memory_space<vmem>>, %arg2: memref<32x112xf32, #tpu.memory_space<vmem>>, %arg3: memref<2x112xf32, #tpu.memory_space<vmem>>, %arg4: memref<1x8x16xf32, #tpu.memory_space<vmem>>) attributes {dimension_semantics = [#tpu.dimension_semantics<parallel>], iteration_bounds = array<i64: 4>, scalar_prefetch = 0 : i64, scratch_operands = 0 : i64, tpu.core_type = #tpu.core_type<tc>, window_params = [{transform_indices = @transform_0, window_bounds = array<i64: 1, 8, 32>}, {pipeline_mode = #tpu.pipeline_mode<synchronous>, transform_indices = @transform_1, window_bounds = array<i64: 32, 112>}, {pipeline_mode = #tpu.pipeline_mode<synchronous>, transform_indices = @transform_2, window_bounds = array<i64: 2, 112>}, {transform_indices = @transform_3, window_bounds = array<i64: 1, 8, 16>}]} {
    %c0 = arith.constant 0 : index
    %c0_0 = arith.constant 0 : index
    %c0_1 = arith.constant 0 : index
    %0 = vector.load %arg1[%c0, %c0_0, %c0_1] : memref<1x8x32xf32, #tpu.memory_space<vmem>>, vector<1x8x32xf32>
    %1 = vector.shape_cast %0 : vector<1x8x32xf32> to vector<8x32xf32>
    %c0_2 = arith.constant 0 : index
    %c0_3 = arith.constant 0 : index
    %2 = vector.load %arg2[%c0_2, %c0_3] : memref<32x112xf32, #tpu.memory_space<vmem>>, vector<32x32xf32>
    %c0_4 = arith.constant 0 : index
    %c0_5 = arith.constant 0 : index
    %3 = vector.load %arg3[%c0_4, %c0_5] : memref<2x112xf32, #tpu.memory_space<vmem>>, vector<1x32xf32>
    %c1 = arith.constant 1 : index
    %c0_6 = arith.constant 0 : index
    %4 = vector.load %arg3[%c1, %c0_6] : memref<2x112xf32, #tpu.memory_space<vmem>>, vector<1x32xf32>
    %cst = arith.constant dense<0.000000e+00> : vector<8x32xf32>
    %5 = tpu.matmul %1, %2, %cst {dimension_numbers = #tpu.dot_dimension_numbers<[1], [0], [0], [1], [0, 0, 1, 1], [], []>} : vector<8x32xf32>, vector<32x32xf32>, vector<8x32xf32> -> vector<8x32xf32>
    %6 = vector.extract_strided_slice %5 {offsets = [0, 0], sizes = [1, 32], strides = [1, 1]} : vector<8x32xf32> to vector<1x32xf32>
    %7 = vector.broadcast %6 : vector<1x32xf32> to vector<8x32xf32>
    %8 = arith.subf %5, %7 : vector<8x32xf32>
    %9 = arith.mulf %8, %8 : vector<8x32xf32>
    %10 = tpu.concatenate %8, %9 in 1 : vector<8x32xf32>, vector<8x32xf32> -> vector<8x64xf32>
    %cst_7 = arith.constant dense<0.000000e+00> : vector<64xf32>
    %11 = vector.multi_reduction <add>, %10, %cst_7 [0] : vector<8x64xf32> to vector<64xf32>
    %12 = vector.shape_cast %11 : vector<64xf32> to vector<1x64xf32>
    %13 = vector.extract_strided_slice %12 {offsets = [0, 0], sizes = [1, 32], strides = [1, 1]} : vector<1x64xf32> to vector<1x32xf32>
    %cst_8 = arith.constant 1.250000e-01 : f32
    %14 = vector.broadcast %cst_8 : f32 to vector<1x32xf32>
    %15 = arith.mulf %13, %14 : vector<1x32xf32>
    %16 = vector.extract_strided_slice %12 {offsets = [0, 32], sizes = [1, 32], strides = [1, 1]} : vector<1x64xf32> to vector<1x32xf32>
    %cst_9 = arith.constant 1.250000e-01 : f32
    %17 = vector.broadcast %cst_9 : f32 to vector<1x32xf32>
    %18 = arith.mulf %16, %17 : vector<1x32xf32>
    %19 = arith.mulf %15, %15 : vector<1x32xf32>
    %20 = arith.subf %18, %19 : vector<1x32xf32>
    %cst_10 = arith.constant 0.000000e+00 : f32
    %21 = vector.broadcast %cst_10 : f32 to vector<1x32xf32>
    %22 = arith.maximumf %20, %21 : vector<1x32xf32>
    %23 = arith.addf %15, %6 : vector<1x32xf32>
    %cst_11 = arith.constant 9.99999974E-6 : f32
    %24 = vector.broadcast %cst_11 : f32 to vector<1x32xf32>
    %25 = arith.addf %22, %24 : vector<1x32xf32>
    %26 = math.rsqrt %25 : vector<1x32xf32>
    %27 = arith.mulf %3, %26 : vector<1x32xf32>
    %28 = arith.mulf %23, %27 : vector<1x32xf32>
    %29 = arith.subf %4, %28 : vector<1x32xf32>
    %30 = vector.broadcast %27 : vector<1x32xf32> to vector<8x32xf32>
    %31 = arith.mulf %5, %30 : vector<8x32xf32>
    %32 = vector.broadcast %29 : vector<1x32xf32> to vector<8x32xf32>
    %33 = arith.addf %31, %32 : vector<8x32xf32>
    %cst_12 = arith.constant 2.000000e-01 : f32
    %34 = vector.broadcast %cst_12 : f32 to vector<8x32xf32>
    %35 = arith.mulf %34, %33 : vector<8x32xf32>
    %36 = arith.maximumf %33, %35 : vector<8x32xf32>
    %c0_13 = arith.constant 0 : index
    %c32 = arith.constant 32 : index
    %37 = vector.load %arg2[%c0_13, %c32] : memref<32x112xf32, #tpu.memory_space<vmem>>, vector<32x32xf32>
    %c0_14 = arith.constant 0 : index
    %c32_15 = arith.constant 32 : index
    %38 = vector.load %arg3[%c0_14, %c32_15] : memref<2x112xf32, #tpu.memory_space<vmem>>, vector<1x32xf32>
    %c1_16 = arith.constant 1 : index
    %c32_17 = arith.constant 32 : index
    %39 = vector.load %arg3[%c1_16, %c32_17] : memref<2x112xf32, #tpu.memory_space<vmem>>, vector<1x32xf32>
    %cst_18 = arith.constant dense<0.000000e+00> : vector<8x32xf32>
    %40 = tpu.matmul %36, %37, %cst_18 {dimension_numbers = #tpu.dot_dimension_numbers<[1], [0], [0], [1], [0, 0, 1, 1], [], []>} : vector<8x32xf32>, vector<32x32xf32>, vector<8x32xf32> -> vector<8x32xf32>
    %41 = vector.extract_strided_slice %40 {offsets = [0, 0], sizes = [1, 32], strides = [1, 1]} : vector<8x32xf32> to vector<1x32xf32>
    %42 = vector.broadcast %41 : vector<1x32xf32> to vector<8x32xf32>
    %43 = arith.subf %40, %42 : vector<8x32xf32>
    %44 = arith.mulf %43, %43 : vector<8x32xf32>
    %45 = tpu.concatenate %43, %44 in 1 : vector<8x32xf32>, vector<8x32xf32> -> vector<8x64xf32>
    %cst_19 = arith.constant dense<0.000000e+00> : vector<64xf32>
    %46 = vector.multi_reduction <add>, %45, %cst_19 [0] : vector<8x64xf32> to vector<64xf32>
    %47 = vector.shape_cast %46 : vector<64xf32> to vector<1x64xf32>
    %48 = vector.extract_strided_slice %47 {offsets = [0, 0], sizes = [1, 32], strides = [1, 1]} : vector<1x64xf32> to vector<1x32xf32>
    %cst_20 = arith.constant 1.250000e-01 : f32
    %49 = vector.broadcast %cst_20 : f32 to vector<1x32xf32>
    %50 = arith.mulf %48, %49 : vector<1x32xf32>
    %51 = vector.extract_strided_slice %47 {offsets = [0, 32], sizes = [1, 32], strides = [1, 1]} : vector<1x64xf32> to vector<1x32xf32>
    %cst_21 = arith.constant 1.250000e-01 : f32
    %52 = vector.broadcast %cst_21 : f32 to vector<1x32xf32>
    %53 = arith.mulf %51, %52 : vector<1x32xf32>
    %54 = arith.mulf %50, %50 : vector<1x32xf32>
    %55 = arith.subf %53, %54 : vector<1x32xf32>
    %cst_22 = arith.constant 0.000000e+00 : f32
    %56 = vector.broadcast %cst_22 : f32 to vector<1x32xf32>
    %57 = arith.maximumf %55, %56 : vector<1x32xf32>
    %58 = arith.addf %50, %41 : vector<1x32xf32>
    %cst_23 = arith.constant 9.99999974E-6 : f32
    %59 = vector.broadcast %cst_23 : f32 to vector<1x32xf32>
    %60 = arith.addf %57, %59 : vector<1x32xf32>
    %61 = math.rsqrt %60 : vector<1x32xf32>
    %62 = arith.mulf %38, %61 : vector<1x32xf32>
    %63 = arith.mulf %58, %62 : vector<1x32xf32>
    %64 = arith.subf %39, %63 : vector<1x32xf32>
    %65 = vector.broadcast %62 : vector<1x32xf32> to vector<8x32xf32>
    %66 = arith.mulf %40, %65 : vector<8x32xf32>
    %67 = vector.broadcast %64 : vector<1x32xf32> to vector<8x32xf32>
    %68 = arith.addf %66, %67 : vector<8x32xf32>
    %cst_24 = arith.constant 2.000000e-01 : f32
    %69 = vector.broadcast %cst_24 : f32 to vector<8x32xf32>
    %70 = arith.mulf %69, %68 : vector<8x32xf32>
    %71 = arith.maximumf %68, %70 : vector<8x32xf32>
    %c0_25 = arith.constant 0 : index
    %c64 = arith.constant 64 : index
    %72 = vector.load %arg2[%c0_25, %c64] : memref<32x112xf32, #tpu.memory_space<vmem>>, vector<32x32xf32>
    %c0_26 = arith.constant 0 : index
    %c64_27 = arith.constant 64 : index
    %73 = vector.load %arg3[%c0_26, %c64_27] : memref<2x112xf32, #tpu.memory_space<vmem>>, vector<1x32xf32>
    %c1_28 = arith.constant 1 : index
    %c64_29 = arith.constant 64 : index
    %74 = vector.load %arg3[%c1_28, %c64_29] : memref<2x112xf32, #tpu.memory_space<vmem>>, vector<1x32xf32>
    %cst_30 = arith.constant dense<0.000000e+00> : vector<8x32xf32>
    %75 = tpu.matmul %71, %72, %cst_30 {dimension_numbers = #tpu.dot_dimension_numbers<[1], [0], [0], [1], [0, 0, 1, 1], [], []>} : vector<8x32xf32>, vector<32x32xf32>, vector<8x32xf32> -> vector<8x32xf32>
    %76 = vector.extract_strided_slice %75 {offsets = [0, 0], sizes = [1, 32], strides = [1, 1]} : vector<8x32xf32> to vector<1x32xf32>
    %77 = vector.broadcast %76 : vector<1x32xf32> to vector<8x32xf32>
    %78 = arith.subf %75, %77 : vector<8x32xf32>
    %79 = arith.mulf %78, %78 : vector<8x32xf32>
    %80 = tpu.concatenate %78, %79 in 1 : vector<8x32xf32>, vector<8x32xf32> -> vector<8x64xf32>
    %cst_31 = arith.constant dense<0.000000e+00> : vector<64xf32>
    %81 = vector.multi_reduction <add>, %80, %cst_31 [0] : vector<8x64xf32> to vector<64xf32>
    %82 = vector.shape_cast %81 : vector<64xf32> to vector<1x64xf32>
    %83 = vector.extract_strided_slice %82 {offsets = [0, 0], sizes = [1, 32], strides = [1, 1]} : vector<1x64xf32> to vector<1x32xf32>
    %cst_32 = arith.constant 1.250000e-01 : f32
    %84 = vector.broadcast %cst_32 : f32 to vector<1x32xf32>
    %85 = arith.mulf %83, %84 : vector<1x32xf32>
    %86 = vector.extract_strided_slice %82 {offsets = [0, 32], sizes = [1, 32], strides = [1, 1]} : vector<1x64xf32> to vector<1x32xf32>
    %cst_33 = arith.constant 1.250000e-01 : f32
    %87 = vector.broadcast %cst_33 : f32 to vector<1x32xf32>
    %88 = arith.mulf %86, %87 : vector<1x32xf32>
    %89 = arith.mulf %85, %85 : vector<1x32xf32>
    %90 = arith.subf %88, %89 : vector<1x32xf32>
    %cst_34 = arith.constant 0.000000e+00 : f32
    %91 = vector.broadcast %cst_34 : f32 to vector<1x32xf32>
    %92 = arith.maximumf %90, %91 : vector<1x32xf32>
    %93 = arith.addf %85, %76 : vector<1x32xf32>
    %cst_35 = arith.constant 9.99999974E-6 : f32
    %94 = vector.broadcast %cst_35 : f32 to vector<1x32xf32>
    %95 = arith.addf %92, %94 : vector<1x32xf32>
    %96 = math.rsqrt %95 : vector<1x32xf32>
    %97 = arith.mulf %73, %96 : vector<1x32xf32>
    %98 = arith.mulf %93, %97 : vector<1x32xf32>
    %99 = arith.subf %74, %98 : vector<1x32xf32>
    %100 = vector.broadcast %97 : vector<1x32xf32> to vector<8x32xf32>
    %101 = arith.mulf %75, %100 : vector<8x32xf32>
    %102 = vector.broadcast %99 : vector<1x32xf32> to vector<8x32xf32>
    %103 = arith.addf %101, %102 : vector<8x32xf32>
    %104 = arith.addf %103, %36 : vector<8x32xf32>
    %cst_36 = arith.constant 2.000000e-01 : f32
    %105 = vector.broadcast %cst_36 : f32 to vector<8x32xf32>
    %106 = arith.mulf %105, %104 : vector<8x32xf32>
    %107 = arith.maximumf %104, %106 : vector<8x32xf32>
    %c0_37 = arith.constant 0 : index
    %c96 = arith.constant 96 : index
    %108 = vector.load %arg2[%c0_37, %c96] : memref<32x112xf32, #tpu.memory_space<vmem>>, vector<32x16xf32>
    %c0_38 = arith.constant 0 : index
    %c96_39 = arith.constant 96 : index
    %109 = vector.load %arg3[%c0_38, %c96_39] : memref<2x112xf32, #tpu.memory_space<vmem>>, vector<1x16xf32>
    %c1_40 = arith.constant 1 : index
    %c96_41 = arith.constant 96 : index
    %110 = vector.load %arg3[%c1_40, %c96_41] : memref<2x112xf32, #tpu.memory_space<vmem>>, vector<1x16xf32>
    %cst_42 = arith.constant dense<0.000000e+00> : vector<8x16xf32>
    %111 = tpu.matmul %107, %108, %cst_42 {dimension_numbers = #tpu.dot_dimension_numbers<[1], [0], [0], [1], [0, 0, 1, 1], [], []>} : vector<8x32xf32>, vector<32x16xf32>, vector<8x16xf32> -> vector<8x16xf32>
    %112 = vector.extract_strided_slice %111 {offsets = [0, 0], sizes = [1, 16], strides = [1, 1]} : vector<8x16xf32> to vector<1x16xf32>
    %113 = vector.broadcast %112 : vector<1x16xf32> to vector<8x16xf32>
    %114 = arith.subf %111, %113 : vector<8x16xf32>
    %115 = arith.mulf %114, %114 : vector<8x16xf32>
    %116 = tpu.concatenate %114, %115 in 1 : vector<8x16xf32>, vector<8x16xf32> -> vector<8x32xf32>
    %cst_43 = arith.constant dense<0.000000e+00> : vector<32xf32>
    %117 = vector.multi_reduction <add>, %116, %cst_43 [0] : vector<8x32xf32> to vector<32xf32>
    %118 = vector.shape_cast %117 : vector<32xf32> to vector<1x32xf32>
    %119 = vector.extract_strided_slice %118 {offsets = [0, 0], sizes = [1, 16], strides = [1, 1]} : vector<1x32xf32> to vector<1x16xf32>
    %cst_44 = arith.constant 1.250000e-01 : f32
    %120 = vector.broadcast %cst_44 : f32 to vector<1x16xf32>
    %121 = arith.mulf %119, %120 : vector<1x16xf32>
    %122 = vector.extract_strided_slice %118 {offsets = [0, 16], sizes = [1, 16], strides = [1, 1]} : vector<1x32xf32> to vector<1x16xf32>
    %cst_45 = arith.constant 1.250000e-01 : f32
    %123 = vector.broadcast %cst_45 : f32 to vector<1x16xf32>
    %124 = arith.mulf %122, %123 : vector<1x16xf32>
    %125 = arith.mulf %121, %121 : vector<1x16xf32>
    %126 = arith.subf %124, %125 : vector<1x16xf32>
    %cst_46 = arith.constant 0.000000e+00 : f32
    %127 = vector.broadcast %cst_46 : f32 to vector<1x16xf32>
    %128 = arith.maximumf %126, %127 : vector<1x16xf32>
    %129 = arith.addf %121, %112 : vector<1x16xf32>
    %cst_47 = arith.constant 9.99999974E-6 : f32
    %130 = vector.broadcast %cst_47 : f32 to vector<1x16xf32>
    %131 = arith.addf %128, %130 : vector<1x16xf32>
    %132 = math.rsqrt %131 : vector<1x16xf32>
    %133 = arith.mulf %109, %132 : vector<1x16xf32>
    %134 = arith.mulf %129, %133 : vector<1x16xf32>
    %135 = arith.subf %110, %134 : vector<1x16xf32>
    %136 = vector.broadcast %133 : vector<1x16xf32> to vector<8x16xf32>
    %137 = arith.mulf %111, %136 : vector<8x16xf32>
    %138 = vector.broadcast %135 : vector<1x16xf32> to vector<8x16xf32>
    %139 = arith.addf %137, %138 : vector<8x16xf32>
    %c0_48 = arith.constant 0 : index
    %c0_49 = arith.constant 0 : index
    %c0_50 = arith.constant 0 : index
    %140 = vector.load %arg4[%c0_48, %c0_49, %c0_50] : memref<1x8x16xf32, #tpu.memory_space<vmem>>, vector<1x8x16xf32>
    %141 = vector.shape_cast %140 : vector<1x8x16xf32> to vector<8x16xf32>
    %142 = vector.shape_cast %139 : vector<8x16xf32> to vector<1x8x16xf32>
    tpu.vector_store %arg4[%c0_48, %c0_49, %c0_50], %142 {strides = array<i32>} : memref<1x8x16xf32, #tpu.memory_space<vmem>>, vector<1x8x16xf32>,
    return
  }
  func.func @transform_0(%arg0: i32) -> (i32, i32, i32) {
    %c0_i32 = arith.constant 0 : i32
    %c0_i32_0 = arith.constant 0 : i32
    %c0_i32_1 = arith.constant 0 : i32
    return %arg0, %c0_i32, %c0_i32_0 : i32, i32, i32
  }
  func.func @transform_1(%arg0: i32) -> (i32, i32) {
    %c0_i32 = arith.constant 0 : i32
    %c0_i32_0 = arith.constant 0 : i32
    %c0_i32_1 = arith.constant 0 : i32
    return %c0_i32, %c0_i32_0 : i32, i32
  }
  func.func @transform_2(%arg0: i32) -> (i32, i32) {
    %c0_i32 = arith.constant 0 : i32
    %c0_i32_0 = arith.constant 0 : i32
    %c0_i32_1 = arith.constant 0 : i32
    return %c0_i32, %c0_i32_0 : i32, i32
  }
  func.func @transform_3(%arg0: i32) -> (i32, i32, i32) {
    %c0_i32 = arith.constant 0 : i32
    %c0_i32_0 = arith.constant 0 : i32
    %c0_i32_1 = arith.constant 0 : i32
    return %arg0, %c0_i32, %c0_i32_0 : i32, i32, i32
  }
}

</mosaic_0001>

<bundles_post_ra>
// kernel: tpu_custom_call.1
= control target key start
LH: loop header
LB: loop body
LE: loop exit
PB: predicated region body
PF: predicated region fallthrough
CT: control target
= control target key end

     0   :  { %8 = vsyncpa [#allocation3], 0  ;;  %s1470_s0 = inlined_call_operand.hbm [shape: f32[4,8,32], index: 0, kind: input, shape index: {}]   ;;  %s1471_s1 = inlined_call_operand.hbm [shape: f32[32,112], index: 1, kind: input, shape index: {}]   ;;  %s1472_s2 = inlined_call_operand.vmem [shape: f32[2,112], index: 2, kind: input, shape index: {}]   ;;  %s1473_s3 = inlined_call_operand.hbm [shape: f32[4,8,16], index: 3, kind: output, shape index: {}]  }
   0x1   :  { %10 = vsyncpa [#allocation3 + $0x1], 0 }
   0x2   :  { %11 = vsyncpa [#allocation6], 0 }
   0x3   :  { %12 = vsyncpa [#allocation4], 0 }
   0x4   :  { %14 = vsyncpa [#allocation4 + $0x1], 0  ;;  %s1185_s12 = smov 0   ;;  %s1187_s13 = smov 0  }
   0x5   :  { %s1189_s14 = smov 0   ;;  %s1191_s15 = smov 0  }
   0x6 LB: > { %s1206_s16 = sadd.s32 4294967295, %s1151_s15   ;;  %s873_s17 = sadd.s32 4294967294, %s1151_s15   ;;  %s1151_s15 = sphi %s1191_s15, %s1494_s15   ;;  %s1147_s14 = sphi %s1189_s14, %s1493_s14   ;;  %s1143_s13 = sphi %s1187_s13, %s1492_s13   ;;  %s1139_s12 = sphi %s1185_s12, %s1491_s12  }
   0x7   : > { %p40_p0 = scmp.ne.s32.totalorder %s1143_s13, %s1139_s12  ;;  %p1474_p1 = scmp.eq.s32.totalorder %s1206_s16, 0 }
   0x8   : > { %p112_p3 = scmp.eq.s32.totalorder %s873_s17, 3  ;;  %p874_p5 = scmp.ge.s32.totalorder %s1151_s15, 1 }
   0x9   : > { %p1215_p4 = por %p1474_p1, %p40_p0  ;;  %p119_p7 = scmp.lt.s32.totalorder %s1151_s15, 5 }
   0xa   : > { %p1220_p6 = por %p112_p3, %p40_p0  ;;  %s1153_s21 = smov [#allocation5]  }
   0xb   : > { %s1478_s18 = scalar_select %p1215_p4, 1, 0 }
   0xc   : > { %s1479_s19 = scalar_select %p1220_p6, 1, 0 }
   0xd   : > { %p1225_p8 = pnand %p874_p5, %p119_p7  ;;  %s131_s22 = sshll.u32 %s1153_s21, 4  ;;  %s132_s22 = int_to_ptr.vmem [resolvable:$true] %s131_s22 }
   0xe   : > { %s1238_s24 = sadd.s32 1, %s1151_s15   ;;  %s27_s25 = sadd.s32 1, %s1147_s14 }
   0xf   : > { %s1480_s20 = scalar_select %p1225_p8, 1, 0 }
  0x10   : > { %p963_p9 = pneg %p1225_p8  ;;  %s24_s26 = ssub.s32 %s1151_s15, %s1238_s24 }
  0x11   : > { %s1040_s27 = scalar_lea.vmem %s132_s22, 512  ;;  %p1048_p3 = scmp.lt.s32.totalorder %s132_s22, %s132_s22 }
  0x12   : > { %p1233_p10 = pnand %p963_p9, %p1474_p1  ;;  %p1041_p12 = scmp.ne.s32.totalorder %s132_s22, %s1040_s27 }
  0x13   : > { %p1049_p5 = scmp.lt.s32.totalorder %s1040_s27, %s1040_s27 }
  0x14   : > { %p1031_p11 = pneg %p1233_p10 }
  0x15   : > { %p1050_p7 = por %p1049_p5, %p1048_p3 }
  0x16   : > { %p1043_p13 = pnand %p1041_p12, %p1031_p11 }
  0x18   : > { %p1044_p0 = pneg %p1043_p13 }
  0x1a   : > { %p1051_p2 = pnand %p1050_p7, %p1044_p0 }
  0x1c   : > { %1054 = shalt.err (!%p1051_p2)
}
  0x1d   : > { %s1154_s28 = smov 128   ;;  %s1155_s29 = smov 8  }
  0x1e   : > { %966 = dma.hbm_to_vmem [thread:$0]  (!%p1233_p10), %s1471_s1, 512, %s132_s22, [#allocation6], %s1154_s28, %s1154_s28, %s1155_s29  }
  0x1f   : > { %p25_p9 = scmp.eq.s32.totalorder %s24_s26, 0  ;;  %p34_p11 = scmp.ne.s32.totalorder %s1147_s14, %s1143_s13 }
  0x20   : > { %p35_p12 = scmp.eq.s32.totalorder %s1151_s15, 0  ;;  %p976_p2 = scmp.lt.s32.totalorder %s1151_s15, 4 }
  0x21   : > { %s1255_s5 = scalar_select %p25_p9, %s1147_s14, %s27_s25  }
  0x22   : > { %p36_p13 = por %p35_p12, %p34_p11  ;;  %p1482_p0 = scmp.eq.s32.totalorder %s1206_s16, 3 }
  0x23   : > { %s148_s7 = sand.u32 1, %s1147_s14   ;;  %s878_s8 = sshll.u32 %s1151_s15, 7 }
  0x24   : > { %p1259_p3 = por %p1482_p0, %p34_p11  ;;  %s877_s9 = sshll.u32 %s148_s7, 3 }
  0x25   : > { %s1268_s17 = scalar_lea.hbm %s1470_s0, %s878_s8  ;;  %s152_s21 = scalar_lea.vmem [#allocation2], %s877_s9 }
  0x26   : > { %s1483_s6 = scalar_select %p1259_p3, 1, 0 }
  0x27   : > { %s159_s22 = sshll.u32 %s152_s21, 4  ;;  %p1270_p10 = pnand %p976_p2, %p36_p13  ;;  %s160_s22 = int_to_ptr.vmem [resolvable:$true] %s159_s22 }
  0x28   : > { %s149_s25 = scalar_lea.sflag [#allocation3], %s148_s7  ;;  %s1055_s26 = scalar_lea.hbm %s1268_s17, 128 }
  0x29   : > { %p1056_p5 = scmp.ne.s32.totalorder %s1268_s17, %s1055_s26  ;;  %p1057_p7 = pneg %p1270_p10 }
  0x2a   : > { %s1060_s29 = scalar_lea.hbm %s1470_s0, 512  ;;  %p1061_p12 = scmp.lt.s32.totalorder %s1268_s17, %s1470_s0 }
  0x2b   : > { %p1058_p9 = pnand %p1057_p7, %p1056_p5  ;;  %p1062_p2 = scmp.lt.s32.totalorder %s1060_s29, %s1055_s26 }
  0x2d   : > { %p1059_p11 = pneg %p1058_p9  ;;  %p1063_p13 = por %p1062_p2, %p1061_p12 }
  0x2f   : > { %p1064_p0 = pnand %p1063_p13, %p1059_p11 }
  0x31   : > { %1067 = shalt.err (!%p1064_p0)
}
  0x32   : > { %s1068_s8 = scalar_lea.vmem %s160_s22, 128  ;;  %s1156_s7 = smov [#allocation2]  }
  0x33   : > { %p1069_p1 = scmp.ne.s32.totalorder %s160_s22, %s1068_s8  ;;  %s1073_s9 = sshll.u32 %s1156_s7, 4  ;;  %s1074_s9 = int_to_ptr.vmem [resolvable:$false] %s1073_s9 }
  0x34   : > { %s1075_s10 = scalar_lea.vmem %s1074_s9, 256  ;;  %p1076_p5 = scmp.lt.s32.totalorder %s160_s22, %s1074_s9 }
  0x35   : > { %p1071_p6 = pnand %p1069_p1, %p1057_p7  ;;  %p1077_p9 = scmp.lt.s32.totalorder %s1075_s10, %s1068_s8 }
  0x37   : > { %p1072_p3 = pneg %p1071_p6  ;;  %p1078_p4 = por %p1077_p9, %p1076_p5 }
  0x39   : > { %p1079_p8 = pnand %p1078_p4, %p1072_p3 }
  0x3b   : > { %1082 = shalt.err (!%p1079_p8)
}
  0x3c   : > { %970 = dma.hbm_to_vmem [thread:$0]  (!%p1270_p10), %s1268_s17, 128, %s160_s22, %s149_s25  }
  0x3d   : > { %p1485_p11 = scmp.ne.s32.totalorder %s1480_s20, 0 }
  0x3e   : > { %s1291_s11 = sand.u32 (!%p1485_p11), 1, %s1143_s13   ;;  %p1486_p1 = scmp.ne.s32.totalorder (!%p1485_p11), %s1478_s18, 0 }
  0x3f   : > { %168 = sbr.rel (%p1485_p11) target bundleno = 3399 (0xd47), region = 32  ;;  %s880_s21 = sshll.u32 (!%p1485_p11), %s1291_s11, 3 }
  0x40   : > { %s171_s26 = scalar_lea.sflag (!%p1485_p11), [#allocation3], %s1291_s11  ;;  %s174_s27 = scalar_lea.vmem (!%p1485_p11), [#allocation2], %s880_s21 }
  0x44   : > { %1126 = dma.done.wait (%p1486_p1), %s171_s26, 128  }
  0x45   : > { %1128 = vsyncadd (%p1486_p1), %s171_s26, 4294967168  ;;  %p1487_p4 = scmp.eq.s32.totalorder %s1206_s16, 0 }
  0x47   : > { %1130 = dma.done.wait (%p1487_p4), [#allocation6], 512   ;;  %p1488_p6 = pmov %p1487_p4 }
  0x48   : > { %v1157_v0 = vmov 0.0   ;;  %vm1158_vm0 = vmmov 0   ;;  %v1311_v1 = vld [vmem:[#allocation5 + $0x18] sm:$0xff]  ;;  %v1313_v2 = vld [vmem:[#allocation5 + $0x10] sm:$0xff]  ;;  %v1317_v3 = vld [vmem:[#allocation5 + $0x8] sm:$0xff]  ;;  %vm208_vm1 = vcmask 261120   ;;  %v282_v6 = vlaneseq }
  0x49   : > { %1132 = vsyncadd (%p1488_p6), [#allocation6], 4294966784  ;;  %911 = vmatprep.subr.mxu0 %v1157_v0  ;;  %919 = vmatprep.mubr.msk.f32.mxu0 %vm1158_vm0, %v1157_v0  ;;  %v1321_v4 = vld [vmem:[#allocation5] sm:$0xff]  ;;  %v201_v5 = vld [vmem:[%s174_s27] sm:$0xff]  ;;  %s1159_s18 = smov 32   ;;  %vm293_vm2 = vcmask 523264  }
  0x4a   : > { %922 = vmatprep.subr.mxu1 %v1157_v0  ;;  %930 = vmatprep.mubr.msk.f32.mxu1 %vm1158_vm0, %v1157_v0  ;;  %v283_v7 = vshrl.u32 %v282_v6, 7  ;;  %s1160_s20 = smov 96   ;;  %v1349_v30 = vld [vmem:[%s1472_s2] sm:$0x1]  ;;  %v1355_v34 = vld [vmem:[%s1472_s2 + $0x1] sm:$0x1] }
  0x4b   : > { %912 = vmatpush3.msra.mxu0 %v1311_v1  ;;  %s1161_s28 = smov 64   ;;  %s1162_s29 = smov 16   ;;  %vm725_vm3 = vcmask 130048  }
  0x4c   : > { %913 = vmatprep.subr.mxu0 %v1157_v0  ;;  %v1330_v8 = vsub.s32 0, %v283_v7  ;;  %s1163_s30 = smov 80   ;;  %s888_s4 = sshll.u32 %s1206_s16, 7 }
  0x4d   : > { %914 = vmatpush3.msra.mxu0 %v1313_v2  ;;  %s200_s8 = scalar_lea.vmem [#allocation7], %s880_s21  ;;  %s791_s26 = scalar_lea.hbm %s1473_s3, %s888_s4 }
  0x4e   : > { %915 = vmatprep.subr.mxu0 %v1157_v0  ;;  %s793_s7 = sshll.u32 %s200_s8, 4  ;;  %s780_s27 = scalar_lea.sflag [#allocation4], %s1291_s11  ;;  %s794_s7 = int_to_ptr.vmem [resolvable:$true] %s793_s7 }
  0x4f   : > { %916 = vmatpush3.msra.mxu0 %v1317_v3  ;;  %p1489_p3 = scmp.ne.s32.totalorder %s1483_s6, 0  ;;  %s1164_s16 = smov [#allocation7]  }
  0x50   : > { %917 = vmatprep.subr.mxu0 %v1157_v0 }
  0x51   : > { %918 = vmatpush3.msra.mxu0 %v1321_v4 }
  0x52   : > { %920 = vmatmul.mubr.msk.f32.vlgmr.msra.gmra.mxu0 %vm208_vm1, %v201_v5  ;;  %933 = vmatprep.subr.mxu0 %v1157_v0 }
  0x53   : > { %941 = vmatprep.mubr.msk.f32.mxu0 %vm1158_vm0, %v1157_v0 }
 0x112   : > { %v278_v9 = vpop.f32.mrf.mxu0 }
 0x113   : > { %v285_v10 = vrot.slane %v278_v9, %v1330_v8 }
 0x114   : > { %v921_v11 = vpop.f32.mrf.mxu0 }
 0x115   : > { %v286_v12 = vsub.f32 %v278_v9, %v285_v10 }
 0x117   : > { %v287_v13 = vmul.f32 %v286_v12, %v286_v12 }
 0x119   : > { %289 = vrot.lane.b32.xlu0 %v287_v13, %s1159_s18 }
 0x18b   : > { %v290_v14 = vpop.permute.xlu0 %289 }
 0x18c   : > { %v292_v15 = vsel %vm208_vm1, %v286_v12, %v290_v14 }
 0x18d   : > { %v294_v16 = vsel %vm293_vm2, %v292_v15, 0.0 }
 0x18e   : > { %v295_v17 = vrot.slane %v294_v16, 4 }
 0x190   : > { %v296_v18 = vadd.f32 %v295_v17, %v294_v16 }
 0x192   : > { %v297_v19 = vrot.slane %v296_v18, 2 }
 0x194   : > { %v298_v20 = vadd.f32 %v297_v19, %v296_v18 }
 0x196   : > { %v299_v21 = vrot.slane %v298_v20, 1 }
 0x198   : > { %v300_v22 = vadd.f32 %v299_v21, %v298_v20 }
 0x19a   : > { %v301_v23 = vmul.f32 0.125, %v300_v22 }
 0x19c   : > { %v302_v24 = vmul.f32 %v301_v23, %v301_v23  ;;  %v309_v32 = vadd.f32 %v301_v23, %v278_v9 }
 0x19e   : > { %304 = vrot.lane.b32.xlu0 %v302_v24, %s1159_s18 }
 0x1a2   : > { %339 = vrot.lane.b32.xlu0 %v1313_v2, %s1160_s20 }
 0x1a6   : > { %335 = vrot.lane.b32.xlu0 %v1321_v4, %s1160_s20 }
 0x210   : > { %v305_v25 = vpop.permute.xlu0 %304 }
 0x211   : > { %v307_v26 = vsub.f32 %v301_v23, %v305_v25 }
 0x213   : > { %v308_v27 = vmax.f32 %v307_v26, 0.0 }
 0x214   : > { %v340_v35 = vpop.permute.xlu0 %339 }
 0x215   : > { %v310_v28 = vadd.f32 1e-05, %v308_v27 }
 0x217   : > { %1021 = vrsqrt.f32 %v310_v28 }
 0x218   : > { %v336_v43 = vpop.permute.xlu0 %335 }
 0x224   : > { %v1022_v29 = vpop.eup %1021 }
 0x225   : > { %313 = vrot.lane.b32.xlu1 %v1022_v29, %s1160_s20 }
 0x229   : > { %341 = vrot.lane.b32.xlu1 %v1311_v1, %s1160_s20 }
 0x22d   : > { %337 = vrot.lane.b32.xlu1 %v1317_v3, %s1160_s20 }
 0x297   : > { %v314_v31 = vpop.permute.xlu1 %313 }
 0x298   : > { %v316_v33 = vmul.f32 %v314_v31, %v1349_v30 }
 0x29a   : > { %v317_v36 = vmul.f32 %v316_v33, %v309_v32  ;;  %v322_v37 = vrot.slane %v316_v33, %v1330_v8 }
 0x29b   : > { %v342_v38 = vpop.permute.xlu1 %341 }
 0x29c   : > { %v318_v39 = vsub.f32 %v1355_v34, %v317_v36  ;;  %923 = vmatpush3.msra.mxu1 %v342_v38  ;;  %v323_v40 = vmul.f32 %v322_v37, %v278_v9 }
 0x29d   : > { %924 = vmatprep.subr.mxu1 %v1157_v0 }
 0x29e   : > { %v327_v41 = vrot.slane %v318_v39, %v1330_v8  ;;  %925 = vmatpush3.msra.mxu1 %v340_v35 }
 0x29f   : > { %v338_v42 = vpop.permute.xlu1 %337  ;;  %926 = vmatprep.subr.mxu1 %v1157_v0 }
 0x2a0   : > { %v328_v44 = vadd.f32 %v327_v41, %v323_v40  ;;  %927 = vmatpush3.msra.mxu1 %v338_v42 }
 0x2a1   : > { %928 = vmatprep.subr.mxu1 %v1157_v0 }
 0x2a2   : > { %v329_v45 = vmul.f32 0.2, %v328_v44  ;;  %929 = vmatpush3.msra.mxu1 %v336_v43 }
 0x2a3   : > { %944 = vmatprep.subr.mxu1 %v1157_v0 }
 0x2a4   : > { %v1364_v46 = vmax.f32 %v328_v44, %v329_v45 }
 0x2a6   : > { %931 = vmatmul.mubr.msk.f32.vlgmr.msra.gmra.mxu1 %vm208_vm1, %v1364_v46 }
 0x2a7   : > { %952 = vmatprep.mubr.msk.f32.mxu1 %vm1158_vm0, %v1157_v0 }
 0x366   : > { %v416_v47 = vpop.f32.mrf.mxu1 }
 0x367   : > { %v423_v48 = vrot.slane %v416_v47, %v1330_v8 }
 0x368   : > { %v932_v49 = vpop.f32.mrf.mxu1 }
 0x369   : > { %v424_v50 = vsub.f32 %v416_v47, %v423_v48 }
 0x36b   : > { %v425_v51 = vmul.f32 %v424_v50, %v424_v50 }
 0x36d   : > { %427 = vrot.lane.b32.xlu1 %v425_v51, %s1159_s18 }
 0x3df   : > { %v428_v52 = vpop.permute.xlu1 %427 }
 0x3e0   : > { %v430_v53 = vsel %vm208_vm1, %v424_v50, %v428_v52 }
 0x3e1   : > { %v431_v54 = vsel %vm293_vm2, %v430_v53, 0.0 }
 0x3e2   : > { %v432_v55 = vrot.slane %v431_v54, 4 }
 0x3e4   : > { %v433_v56 = vadd.f32 %v432_v55, %v431_v54 }
 0x3e6   : > { %v434_v57 = vrot.slane %v433_v56, 2 }
 0x3e8   : > { %v435_v58 = vadd.f32 %v434_v57, %v433_v56 }
 0x3ea   : > { %v436_v59 = vrot.slane %v435_v58, 1 }
 0x3ec   : > { %v437_v60 = vadd.f32 %v436_v59, %v435_v58 }
 0x3ee   : > { %v438_v61 = vmul.f32 0.125, %v437_v60 }
 0x3f0   : > { %v439_v62 = vmul.f32 %v438_v61, %v438_v61  ;;  %v446_v12 = vadd.f32 %v438_v61, %v416_v47 }
 0x3f2   : > { %441 = vrot.lane.b32.xlu0 %v439_v62, %s1159_s18 }
 0x464   : > { %v442_v63 = vpop.permute.xlu0 %441 }
 0x465   : > { %v444_v5 = vsub.f32 %v438_v61, %v442_v63 }
 0x467   : > { %v445_v6 = vmax.f32 %v444_v5, 0.0 }
 0x469   : > { %v447_v7 = vadd.f32 1e-05, %v445_v6 }
 0x46b   : > { %1023 = vrsqrt.f32 %v447_v7 }
 0x478   : > { %v1024_v9 = vpop.eup %1023 }
 0x479   : > { %v449_v10 = vmul.f32 %v1024_v9, %v1349_v30 }
 0x47b   : > { %451 = vrot.lane.b32.xlu1 %v449_v10, %s1160_s20  ;;  %v463_v11 = vrot.slane %v449_v10, %v1330_v8 }
 0x47f   : > { %465 = vrot.lane.b32.xlu1 %v463_v11, %s1160_s20 }
 0x4ed   : > { %v452_v13 = vpop.permute.xlu1 %451 }
 0x4ee   : > { %v454_v14 = vmul.f32 %v452_v13, %v446_v12 }
 0x4f0   : > { %456 = vrot.lane.b32.xlu0 %v454_v14, %s1159_s18 }
 0x4f1   : > { %v466_v20 = vpop.permute.xlu1 %465 }
 0x4f2   : > { %v468_v21 = vmul.f32 %v466_v20, %v416_v47 }
 0x4f4   : > { %486 = vrot.lane.b32.xlu0 %v1311_v1, %s1161_s28 }
 0x4f8   : > { %484 = vrot.lane.b32.xlu0 %v1313_v2, %s1161_s28 }
 0x4fc   : > { %480 = vrot.lane.b32.xlu0 %v1321_v4, %s1161_s28 }
 0x562   : > { %v457_v15 = vpop.permute.xlu0 %456 }
 0x563   : > { %v459_v16 = vsub.f32 %v1355_v34, %v457_v15 }
 0x565   : > { %v472_v17 = vrot.slane %v459_v16, %v1330_v8 }
 0x566   : > { %v487_v18 = vpop.permute.xlu0 %486 }
 0x567   : > { %474 = vrot.lane.b32.xlu1 %v472_v17, %s1160_s20  ;;  %934 = vmatpush3.msra.mxu0 %v487_v18 }
 0x568   : > { %935 = vmatprep.subr.mxu0 %v1157_v0 }
 0x56a   : > { %v485_v19 = vpop.permute.xlu0 %484 }
 0x56b   : > { %482 = vrot.lane.b32.xlu1 %v1317_v3, %s1161_s28  ;;  %936 = vmatpush3.msra.mxu0 %v485_v19 }
 0x56c   : > { %937 = vmatprep.subr.mxu0 %v1157_v0 }
 0x56e   : > { %v481_v26 = vpop.permute.xlu0 %480 }
 0x5d9   : > { %v475_v22 = vpop.permute.xlu1 %474 }
 0x5da   : > { %v477_v23 = vadd.f32 %v475_v22, %v468_v21 }
 0x5dc   : > { %v478_v24 = vmul.f32 0.2, %v477_v23 }
 0x5dd   : > { %v483_v25 = vpop.permute.xlu1 %482 }
 0x5de   : > { %v479_v27 = vmax.f32 %v477_v23, %v478_v24  ;;  %938 = vmatpush3.msra.mxu0 %v483_v25 }
 0x5df   : > { %939 = vmatprep.subr.mxu0 %v1157_v0 }
 0x5e0   : > { %940 = vmatpush3.msra.mxu0 %v481_v26 }
 0x5e1   : > { %942 = vmatmul.mubr.msk.f32.vlgmr.msra.gmra.mxu0 %vm208_vm1, %v479_v27 }
 0x6a1   : > { %v561_v28 = vpop.f32.mrf.mxu0 }
 0x6a2   : > { %v568_v29 = vrot.slane %v561_v28, %v1330_v8 }
 0x6a3   : > { %v943_v31 = vpop.f32.mrf.mxu0 }
 0x6a4   : > { %v569_v32 = vsub.f32 %v561_v28, %v568_v29 }
 0x6a6   : > { %v570_v33 = vmul.f32 %v569_v32, %v569_v32 }
 0x6a8   : > { %572 = vrot.lane.b32.xlu1 %v570_v33, %s1159_s18 }
 0x71a   : > { %v573_v35 = vpop.permute.xlu1 %572 }
 0x71b   : > { %v575_v36 = vsel %vm208_vm1, %v569_v32, %v573_v35 }
 0x71c   : > { %v576_v37 = vsel %vm293_vm2, %v575_v36, 0.0 }
 0x71d   : > { %v577_v38 = vrot.slane %v576_v37, 4 }
 0x71f   : > { %v578_v39 = vadd.f32 %v577_v38, %v576_v37 }
 0x721   : > { %v579_v40 = vrot.slane %v578_v39, 2 }
 0x723   : > { %v580_v41 = vadd.f32 %v579_v40, %v578_v39 }
 0x725   : > { %v581_v42 = vrot.slane %v580_v41, 1 }
 0x727   : > { %v582_v43 = vadd.f32 %v581_v42, %v580_v41 }
 0x729   : > { %v583_v44 = vmul.f32 0.125, %v582_v43 }
 0x72b   : > { %v584_v45 = vmul.f32 %v583_v44, %v583_v44  ;;  %v591_v55 = vadd.f32 %v583_v44, %v561_v28 }
 0x72d   : > { %586 = vrot.lane.b32.xlu0 %v584_v45, %s1159_s18 }
 0x79f   : > { %v587_v47 = vpop.permute.xlu0 %586 }
 0x7a0   : > { %v589_v48 = vsub.f32 %v583_v44, %v587_v47 }
 0x7a2   : > { %v590_v49 = vmax.f32 %v589_v48, 0.0 }
 0x7a4   : > { %v592_v50 = vadd.f32 1e-05, %v590_v49 }
 0x7a6   : > { %1025 = vrsqrt.f32 %v592_v50 }
 0x7b3   : > { %v1026_v51 = vpop.eup %1025 }
 0x7b4   : > { %595 = vrot.lane.b32.xlu1 %v1026_v51, %s1159_s18 }
 0x826   : > { %v596_v52 = vpop.permute.xlu1 %595 }
 0x827   : > { %v598_v53 = vmul.f32 %v596_v52, %v1349_v30 }
 0x829   : > { %600 = vrot.lane.b32.xlu0 %v598_v53, %s1161_s28  ;;  %v612_v54 = vrot.slane %v598_v53, %v1330_v8 }
 0x82d   : > { %614 = vrot.lane.b32.xlu0 %v612_v54, %s1161_s28 }
 0x831   : > { %636 = vrot.lane.b32.xlu0 %v1311_v1, %s1159_s18 }
 0x835   : > { %632 = vrot.lane.b32.xlu0 %v1317_v3, %s1159_s18 }
 0x89b   : > { %v601_v56 = vpop.permute.xlu0 %600 }
 0x89c   : > { %v603_v57 = vmul.f32 %v601_v56, %v591_v55 }
 0x89e   : > { %605 = vrot.lane.b32.xlu1 %v603_v57, %s1161_s28 }
 0x89f   : > { %v615_v58 = vpop.permute.xlu0 %614 }
 0x8a0   : > { %v617_v1 = vmul.f32 %v615_v58, %v561_v28 }
 0x8a3   : > { %v637_v59 = vpop.permute.xlu0 %636 }
 0x8a4   : > { %945 = vmatpush3.msra.mxu1 %v637_v59 }
 0x8a5   : > { %946 = vmatprep.subr.mxu1 %v1157_v0 }
 0x8a7   : > { %v633_v7 = vpop.permute.xlu0 %632 }
 0x910   : > { %v606_v60 = vpop.permute.xlu1 %605 }
 0x911   : > { %v608_v61 = vsub.f32 %v1355_v34, %v606_v60 }
 0x913   : > { %v621_v62 = vrot.slane %v608_v61, %v1330_v8 }
 0x915   : > { %623 = vrot.lane.b32.xlu1 %v621_v62, %s1161_s28 }
 0x919   : > { %634 = vrot.lane.b32.xlu1 %v1313_v2, %s1159_s18 }
 0x91d   : > { %630 = vrot.lane.b32.xlu1 %v1321_v4, %s1159_s18 }
 0x987   : > { %v624_v3 = vpop.permute.xlu1 %623 }
 0x988   : > { %v626_v63 = vadd.f32 %v624_v3, %v617_v1 }
 0x98a   : > { %v627_v5 = vadd.f32 %v626_v63, %v1364_v46 }
 0x98b   : > { %v635_v6 = vpop.permute.xlu1 %634 }
 0x98c   : > { %v628_v9 = vmul.f32 0.2, %v627_v5  ;;  %947 = vmatpush3.msra.mxu1 %v635_v6 }
 0x98d   : > { %948 = vmatprep.subr.mxu1 %v1157_v0 }
 0x98e   : > { %v629_v10 = vmax.f32 %v627_v5, %v628_v9  ;;  %949 = vmatpush3.msra.mxu1 %v633_v7 }
 0x98f   : > { %v631_v11 = vpop.permute.xlu1 %630  ;;  %950 = vmatprep.subr.mxu1 %v1157_v0 }
 0x990   : > { %951 = vmatpush3.msra.mxu1 %v631_v11 }
 0x991   : > { %953 = vmatmul.mubr.msk.f32.vlgmr.msra.gmra.mxu1 %vm208_vm1, %v629_v10 }
 0xa51   : > { %v711_v2 = vpop.f32.mrf.mxu1 }
 0xa52   : > { %v718_v4 = vrot.slane %v711_v2, %v1330_v8 }
 0xa53   : > { %v954_v12 = vpop.f32.mrf.mxu1 }
 0xa54   : > { %v719_v13 = vsub.f32 %v711_v2, %v718_v4 }
 0xa56   : > { %v720_v46 = vmul.f32 %v719_v13, %v719_v13 }
 0xa58   : > { %722 = vrot.lane.b32.xlu0 %v720_v46, %s1162_s29 }
 0xaca   : > { %v723_v14 = vpop.permute.xlu0 %722 }
 0xacb   : > { %v726_v15 = vsel %vm725_vm3, %v719_v13, %v723_v14 }
 0xacc   : > { %v727_v16 = vsel %vm208_vm1, %v726_v15, 0.0 }
 0xacd   : > { %v728_v17 = vrot.slane %v727_v16, 4 }
 0xacf   : > { %v729_v18 = vadd.f32 %v728_v17, %v727_v16 }
 0xad1   : > { %v730_v0 = vrot.slane %v729_v18, 2 }
 0xad3   : > { %v731_v19 = vadd.f32 %v730_v0, %v729_v18 }
 0xad5   : > { %v732_v20 = vrot.slane %v731_v19, 1 }
 0xad7   : > { %v733_v21 = vadd.f32 %v732_v20, %v731_v19 }
 0xad9   : > { %v734_v22 = vmul.f32 0.125, %v733_v21 }
 0xadb   : > { %v735_v23 = vmul.f32 %v734_v22, %v734_v22  ;;  %v742_v33 = vadd.f32 %v734_v22, %v711_v2 }
 0xadd   : > { %737 = vrot.lane.b32.xlu1 %v735_v23, %s1162_s29 }
 0xb4f   : > { %v738_v24 = vpop.permute.xlu1 %737 }
 0xb50   : > { %v740_v25 = vsub.f32 %v734_v22, %v738_v24 }
 0xb52   : > { %v741_v26 = vmax.f32 %v740_v25, 0.0 }
 0xb54   : > { %v743_v27 = vadd.f32 1e-05, %v741_v26 }
 0xb56   : > { %1027 = vrsqrt.f32 %v743_v27 }
 0xb63   : > { %v1028_v28 = vpop.eup %1027 }
 0xb64   : > { %746 = vrot.lane.b32.xlu0 %v1028_v28, %s1163_s30 }
 0xbd6   : > { %v747_v29 = vpop.permute.xlu0 %746 }
 0xbd7   : > { %v749_v31 = vmul.f32 %v747_v29, %v1349_v30 }
 0xbd9   : > { %751 = vrot.lane.b32.xlu1 %v749_v31, %s1159_s18  ;;  %v763_v32 = vrot.slane %v749_v31, %v1330_v8 }
 0xbdd   : > { %765 = vrot.lane.b32.xlu1 %v763_v32, %s1159_s18 }
 0xc4b   : > { %v752_v35 = vpop.permute.xlu1 %751 }
 0xc4c   : > { %v754_v36 = vmul.f32 %v752_v35, %v742_v33 }
 0xc4e   : > { %756 = vrot.lane.b32.xlu0 %v754_v36, %s1160_s20  ;;  %s1083_s20 = scalar_lea.vmem %s794_s7, 128 }
 0xc4f   : > { %v766_v30 = vpop.permute.xlu1 %765  ;;  %p1084_p8 = scmp.ne.s32.totalorder %s794_s7, %s1083_s20 }
 0xc50   : > { %v768_v40 = vmul.f32 %v766_v30, %v711_v2 }
 0xc51   : > { %p1085_p10 = pnand %p1084_p8, %p1489_p3 }
 0xc53   : > { %p1086_p7 = pneg %p1085_p10 }
 0xcc0   : > { %v757_v37 = vpop.permute.xlu0 %756 }
 0xcc1   : > { %v759_v38 = vsub.f32 %v1355_v34, %v757_v37 }
 0xcc3   : > { %v772_v39 = vrot.slane %v759_v38, %v1330_v8 }
 0xcc5   : > { %774 = vrot.lane.b32.xlu0 %v772_v39, %s1159_s18  ;;  %s1087_s18 = sshll.u32 %s1164_s16, 4  ;;  %s1088_s18 = int_to_ptr.vmem [resolvable:$false] %s1087_s18 }
 0xcc6   : > { %s1089_s21 = scalar_lea.vmem %s1088_s18, 256  ;;  %p1090_p12 = scmp.lt.s32.totalorder %s794_s7, %s1088_s18 }
 0xcc7   : > { %p1091_p2 = scmp.lt.s32.totalorder %s1089_s21, %s1083_s20 }
 0xcc9   : > { %p1092_p13 = por %p1091_p2, %p1090_p12 }
 0xccb   : > { %p1093_p0 = pnand %p1092_p13, %p1086_p7 }
 0xd37   : > { %v775_v41 = vpop.permute.xlu0 %774 }
 0xd38   : > { %v777_v42 = vadd.f32 %v775_v41, %v768_v40 }
 0xd3a   : > { %778 = vst.msk [vmem:[%s200_s8] sm:$0xff] %vm725_vm3, %v777_v42 }
 0xd3b   : > { %1096 = shalt.err (!%p1093_p0)
}
 0xd3c   : > { %s1097_s17 = scalar_lea.hbm %s791_s26, 128  ;;  %s1101_s23 = scalar_lea.hbm %s1473_s3, 512 }
 0xd3d   : > { %p1098_p5 = scmp.ne.s32.totalorder %s791_s26, %s1097_s17  ;;  %p1102_p1 = scmp.lt.s32.totalorder %s791_s26, %s1473_s3 }
 0xd3e   : > { %p1103_p4 = scmp.lt.s32.totalorder %s1101_s23, %s1097_s17 }
 0xd3f   : > { %p1099_p9 = pnand %p1098_p5, %p1489_p3 }
 0xd40   : > { %p1104_p6 = por %p1103_p4, %p1102_p1 }
 0xd41   : > { %p1100_p11 = pneg %p1099_p9 }
 0xd43   : > { %p1105_p8 = pnand %p1104_p6, %p1100_p11 }
 0xd45   : > { %1108 = shalt.err (!%p1105_p8)
}
 0xd46   : > { %961 = dma.vmem_to_hbm [thread:$0]  (%p1489_p3), %s794_s7, 128, %s791_s26, %s780_s27  }
 0xd47 PF: > { %p978_p10 = scmp.ge.s32.totalorder %s1151_s15, 2  ;;  %s805_s29 = sand.u32 1, %s1139_s12  }
 0xd48   : > { %p1490_p7 = scmp.ne.s32.totalorder %s1479_s19, 0  ;;  %s806_s30 = scalar_lea.sflag [#allocation4], %s805_s29 }
 0xd4a   : > { %p972_p12 = pnand %p978_p10, %p1490_p7 }
 0xd4c   : > { %p973_p2 = pneg %p972_p12 }
 0xd4e   : > { %1134 = dma.done.wait (%p973_p2), %s806_s30, 128  }
 0xd4f   : > { %1136 = vsyncadd (%p973_p2), %s806_s30, 4294967168  ;;  %p17_p13 = scmp.ge.s32.totalorder %s1238_s24, 6   ;;  %s1491_s12 = smov %s1143_s13 }
 0xd50   : > { %s1492_s13 = smov %s1147_s14  ;;  %s1493_s14 = smov %s1255_s5 }
 0xd51   : > { %s1494_s15 = smov %s1238_s24  ;;  %19 = sbr.rel (!%p17_p13) target bundleno = 6 (0x6), region = 81 }
 0xd56   :  { %811 = vsyncpa [#allocation3], 1 }
 0xd57   :  { %813 = vsyncpa [#allocation3 + $0x1], 1 }
 0xd58   :  { %814 = vsyncpa [#allocation6], 1 }
 0xd59   :  { %815 = vsyncpa [#allocation4], 1 }
 0xd5a   :  { %817 = vsyncpa [#allocation4 + $0x1], 1 }

</bundles_post_ra>
